<compile_context>
chip_gen: v5e
topology: v5e:2x2
jax: 0.10.0
libtpu: 0.0.40
codegen_flags: <defaults>
</compile_context>

<pallas_src>
import jax
import jax.numpy as jnp
from jax.experimental import pallas as pl
from jax.experimental.pallas import tpu as pltpu

LANE = 128  # vreg lane width


def _round_up(x, m):
    return (x + m - 1) // m * m


def pg_model_kernel(obs_ref, w1_ref, b1_ref, w2_ref, b2_ref, out_ref):
    act_dim = out_ref.shape[-1]

    # fc1 + tanh  (MXU matmul, f32 accumulate; tanh on the EUP)
    x = obs_ref[...]                                                # (TB, obs_dim)
    h = jnp.dot(x, w1_ref[...], preferred_element_type=jnp.float32)
    h = jnp.tanh(h + b1_ref[...])                                   # (TB, hid_p)

    # fc2 (padded logit columns carry a -1e30 bias -> exp underflows to exactly 0)
    logits = jnp.dot(h, w2_ref[...], preferred_element_type=jnp.float32)
    logits = logits + b2_ref[...]                                   # (TB, act_p)

    # numerically stable softmax over the (padded) last dim; exact division keeps
    # the result within f32 rounding of the reference (approx recip was too lossy).
    m = jnp.max(logits, axis=-1, keepdims=True)
    e = jnp.exp(logits - m)
    denom = jnp.sum(e, axis=-1, keepdims=True)
    probs = e / denom                                               # (TB, act_p)

    # Narrow store: only the real act_dim probabilities hit HBM (32x less writeback
    # than the padded 128-lane slab, and no wrapper-side slice afterwards).
    out_ref[...] = probs[:, :act_dim]


def pg_model_forward(obs, w1, b1, w2, b2, *, block_rows=1024):
    """obs: (B, obs_dim); w1: (obs_dim, hid); b1: (hid,); w2: (hid, act_dim); b2: (act_dim,).
    Weights are stored pre-transposed (in_features, out_features) relative to PyTorch."""
    B, obs_dim = obs.shape
    hid = w1.shape[1]
    act_dim = w2.shape[1]

    hid_p = _round_up(hid, LANE)
    act_p = _round_up(act_dim, LANE)

    # Lane-dense (128-wide) padded parameters.  obs_dim (K) is left unpadded on purpose.
    w1_p = jnp.zeros((obs_dim, hid_p), jnp.float32).at[:, :hid].set(w1)
    b1_p = jnp.zeros((1, hid_p), jnp.float32).at[:, :hid].set(b1.reshape(1, -1))
    w2_p = jnp.zeros((hid_p, act_p), jnp.float32).at[:hid, :act_dim].set(w2)
    # Padded logit columns get a huge (finite) negative bias so softmax gives them 0.
    b2_p = jnp.full((1, act_p), -1e30, jnp.float32).at[:, :act_dim].set(b2.reshape(1, -1))

    # Batch tile: big enough to amortize per-step overhead, but capped at ceil(B/2)
    # (rounded to a sublane multiple) so the grid has >= 2 steps for the 2-TC
    # "parallel" split on v7x whenever there is enough work to split.
    half = _round_up(pl.cdiv(B, 2), 8)
    TB = max(8, min(block_rows, half))
    B_p = _round_up(B, TB)
    obs_p = obs if B_p == B else jnp.zeros((B_p, obs_dim), jnp.float32).at[:B].set(obs)

    grid = (B_p // TB,)

    out = pl.pallas_call(
        pg_model_kernel,
        out_shape=jax.ShapeDtypeStruct((B_p, act_dim), jnp.float32),
        grid=grid,
        in_specs=[
            pl.BlockSpec((TB, obs_dim), lambda i: (i, 0)),     # batch-tiled activations
            pl.BlockSpec((obs_dim, hid_p), lambda i: (0, 0)),  # weights resident in VMEM
            pl.BlockSpec((1, hid_p), lambda i: (0, 0)),
            pl.BlockSpec((hid_p, act_p), lambda i: (0, 0)),
            pl.BlockSpec((1, act_p), lambda i: (0, 0)),
        ],
        # Narrow output block: last dim equals the full array dim (act_dim), so the
        # spec is legal; writeback is 16 B/row instead of 512 B/row.
        out_specs=pl.BlockSpec((TB, act_dim), lambda i: (i, 0)),
        compiler_params=pltpu.CompilerParams(
            dimension_semantics=("parallel",)),                # batch axis over the TCs
    )(obs_p, w1_p, b1_p, w2_p, b2_p)

    # Padded batch rows (if any) are finite garbage and must stay sliced away.
    return out if B_p == B else out[:B]


def init_params(key, obs_dim, act_dim):
    """Deterministic init mimicking nn.Linear's U(-1/sqrt(fan_in), 1/sqrt(fan_in))."""
    hid = act_dim * 10
    k1, k2, k3, k4 = jax.random.split(key, 4)
    bound1 = 1.0 / jnp.sqrt(obs_dim)
    bound2 = 1.0 / jnp.sqrt(hid)
    # Stored as (in_features, out_features) == W^T relative to PyTorch layout.
    w1 = jax.random.uniform(k1, (obs_dim, hid), jnp.float32, -bound1, bound1)
    b1 = jax.random.uniform(k2, (hid,), jnp.float32, -bound1, bound1)
    w2 = jax.random.uniform(k3, (hid, act_dim), jnp.float32, -bound2, bound2)
    b2 = jax.random.uniform(k4, (act_dim,), jnp.float32, -bound2, bound2)
    return w1, b1, w2, b2


def _reference(obs, w1, b1, w2, b2):
    h = jnp.tanh(obs @ w1 + b1[None, :])
    logits = h @ w2 + b2[None, :]
    return jax.nn.softmax(logits, axis=-1)


if __name__ == "__main__":
    key = jax.random.PRNGKey(0)
    k_obs, k_params = jax.random.split(key)

    batch, obs_dim, act_dim = 8, 32, 4   # hid1_size = act_dim * 10 = 40
    obs = jax.random.normal(k_obs, (batch, obs_dim), dtype=jnp.float32)
    w1, b1, w2, b2 = init_params(k_params, obs_dim, act_dim)

    act = pg_model_forward(obs, w1, b1, w2, b2)
    act = jax.block_until_ready(act)

    # correctness vs. pure-JAX reference (exact softmax division -> only matmul
    # accumulation-order noise remains, well under 1e-4)
    ref = _reference(obs, w1, b1, w2, b2)
    assert act.shape == (batch, act_dim)
    assert bool(jnp.all(jnp.abs(act - ref) < 1e-4))
    row_sums = jnp.sum(act, axis=-1)
    assert bool(jnp.all(jnp.abs(row_sums - 1.0) < 1e-4))

    print("KERNEL_OK")
</pallas_src>

<mosaic_0001>
module attributes {stable_mosaic.version = 11 : i64} {
  func.func @pg_model_kernel(%arg0: i32, %arg1: memref<8x32xf32, #tpu.memory_space<vmem>>, %arg2: memref<32x128xf32, #tpu.memory_space<vmem>>, %arg3: memref<1x128xf32, #tpu.memory_space<vmem>>, %arg4: memref<128x128xf32, #tpu.memory_space<vmem>>, %arg5: memref<1x128xf32, #tpu.memory_space<vmem>>, %arg6: memref<8x4xf32, #tpu.memory_space<vmem>>) attributes {dimension_semantics = [#tpu.dimension_semantics<parallel>], iteration_bounds = array<i64: 1>, scalar_prefetch = 0 : i64, scratch_operands = 0 : i64, tpu.core_type = #tpu.core_type<tc>, window_params = [{transform_indices = @transform_0, window_bounds = array<i64: 8, 32>}, {pipeline_mode = #tpu.pipeline_mode<synchronous>, transform_indices = @transform_1, window_bounds = array<i64: 32, 128>}, {pipeline_mode = #tpu.pipeline_mode<synchronous>, transform_indices = @transform_2, window_bounds = array<i64: 1, 128>}, {pipeline_mode = #tpu.pipeline_mode<synchronous>, transform_indices = @transform_3, window_bounds = array<i64: 128, 128>}, {pipeline_mode = #tpu.pipeline_mode<synchronous>, transform_indices = @transform_4, window_bounds = array<i64: 1, 128>}, {transform_indices = @transform_5, window_bounds = array<i64: 8, 4>}]} {
    %c0 = arith.constant 0 : index
    %c0_0 = arith.constant 0 : index
    %0 = vector.load %arg1[%c0, %c0_0] : memref<8x32xf32, #tpu.memory_space<vmem>>, vector<8x32xf32>
    %c0_1 = arith.constant 0 : index
    %c0_2 = arith.constant 0 : index
    %1 = vector.load %arg2[%c0_1, %c0_2] : memref<32x128xf32, #tpu.memory_space<vmem>>, vector<32x128xf32>
    %cst = arith.constant dense<0.000000e+00> : vector<8x128xf32>
    %2 = tpu.matmul %0, %1, %cst {dimension_numbers = #tpu.dot_dimension_numbers<[1], [0], [0], [1], [0, 0, 1, 1], [], []>} : vector<8x32xf32>, vector<32x128xf32>, vector<8x128xf32> -> vector<8x128xf32>
    %c0_3 = arith.constant 0 : index
    %c0_4 = arith.constant 0 : index
    %3 = vector.load %arg3[%c0_3, %c0_4] : memref<1x128xf32, #tpu.memory_space<vmem>>, vector<1x128xf32>
    %4 = vector.broadcast %3 : vector<1x128xf32> to vector<8x128xf32>
    %5 = arith.addf %2, %4 : vector<8x128xf32>
    %6 = math.tanh %5 : vector<8x128xf32>
    %c0_5 = arith.constant 0 : index
    %c0_6 = arith.constant 0 : index
    %7 = vector.load %arg4[%c0_5, %c0_6] : memref<128x128xf32, #tpu.memory_space<vmem>>, vector<128x128xf32>
    %cst_7 = arith.constant dense<0.000000e+00> : vector<8x128xf32>
    %8 = tpu.matmul %6, %7, %cst_7 {dimension_numbers = #tpu.dot_dimension_numbers<[1], [0], [0], [1], [0, 0, 1, 1], [], []>} : vector<8x128xf32>, vector<128x128xf32>, vector<8x128xf32> -> vector<8x128xf32>
    %c0_8 = arith.constant 0 : index
    %c0_9 = arith.constant 0 : index
    %9 = vector.load %arg5[%c0_8, %c0_9] : memref<1x128xf32, #tpu.memory_space<vmem>>, vector<1x128xf32>
    %10 = vector.broadcast %9 : vector<1x128xf32> to vector<8x128xf32>
    %11 = arith.addf %8, %10 : vector<8x128xf32>
    %cst_10 = arith.constant dense<0xFF800000> : vector<8xf32>
    %12 = vector.multi_reduction <maximumf>, %11, %cst_10 [1] : vector<8x128xf32> to vector<8xf32>
    %13 = vector.shape_cast %12 : vector<8xf32> to vector<8x1xf32>
    %14 = vector.broadcast %13 : vector<8x1xf32> to vector<8x128xf32>
    %15 = arith.subf %11, %14 : vector<8x128xf32>
    %16 = math.exp %15 : vector<8x128xf32>
    %cst_11 = arith.constant dense<0.000000e+00> : vector<8xf32>
    %17 = vector.multi_reduction <add>, %16, %cst_11 [1] : vector<8x128xf32> to vector<8xf32>
    %18 = vector.shape_cast %17 : vector<8xf32> to vector<8x1xf32>
    %19 = vector.broadcast %18 : vector<8x1xf32> to vector<8x128xf32>
    %20 = arith.divf %16, %19 : vector<8x128xf32>
    %21 = vector.extract_strided_slice %20 {offsets = [0, 0], sizes = [8, 4], strides = [1, 1]} : vector<8x128xf32> to vector<8x4xf32>
    %c0_12 = arith.constant 0 : index
    %c0_13 = arith.constant 0 : index
    %22 = vector.load %arg6[%c0_12, %c0_13] : memref<8x4xf32, #tpu.memory_space<vmem>>, vector<8x4xf32>
    tpu.vector_store %arg6[%c0_12, %c0_13], %21 {strides = array<i32>} : memref<8x4xf32, #tpu.memory_space<vmem>>, vector<8x4xf32>,
    return
  }
  func.func @transform_0(%arg0: i32) -> (i32, i32) {
    %c0_i32 = arith.constant 0 : i32
    %c0_i32_0 = arith.constant 0 : i32
    return %arg0, %c0_i32 : i32, i32
  }
  func.func @transform_1(%arg0: i32) -> (i32, i32) {
    %c0_i32 = arith.constant 0 : i32
    %c0_i32_0 = arith.constant 0 : i32
    %c0_i32_1 = arith.constant 0 : i32
    return %c0_i32, %c0_i32_0 : i32, i32
  }
  func.func @transform_2(%arg0: i32) -> (i32, i32) {
    %c0_i32 = arith.constant 0 : i32
    %c0_i32_0 = arith.constant 0 : i32
    %c0_i32_1 = arith.constant 0 : i32
    return %c0_i32, %c0_i32_0 : i32, i32
  }
  func.func @transform_3(%arg0: i32) -> (i32, i32) {
    %c0_i32 = arith.constant 0 : i32
    %c0_i32_0 = arith.constant 0 : i32
    %c0_i32_1 = arith.constant 0 : i32
    return %c0_i32, %c0_i32_0 : i32, i32
  }
  func.func @transform_4(%arg0: i32) -> (i32, i32) {
    %c0_i32 = arith.constant 0 : i32
    %c0_i32_0 = arith.constant 0 : i32
    %c0_i32_1 = arith.constant 0 : i32
    return %c0_i32, %c0_i32_0 : i32, i32
  }
  func.func @transform_5(%arg0: i32) -> (i32, i32) {
    %c0_i32 = arith.constant 0 : i32
    %c0_i32_0 = arith.constant 0 : i32
    return %arg0, %c0_i32 : i32, i32
  }
}

</mosaic_0001>

<bundles_post_ra>
// kernel: tpu_custom_call.1
= control target key start
LH: loop header
LB: loop body
LE: loop exit
PB: predicated region body
PF: predicated region fallthrough
CT: control target
= control target key end

     0   :  { %10 = vsyncpa [#allocation3], 0  ;;  %s312_s0 = inlined_call_operand.hbm [shape: f32[8,32], index: 0, kind: input, shape index: {}]   ;;  %s313_s1 = inlined_call_operand.hbm [shape: f32[32,128], index: 1, kind: input, shape index: {}]   ;;  %s314_s2 = inlined_call_operand.vmem [shape: f32[1,128], index: 2, kind: input, shape index: {}]   ;;  %s315_s3 = inlined_call_operand.hbm [shape: f32[128,128], index: 3, kind: input, shape index: {}]   ;;  %s316_s4 = inlined_call_operand.vmem [shape: f32[1,128], index: 4, kind: input, shape index: {}]   ;;  %s317_s5 = inlined_call_operand.vmem [shape: f32[8,4], index: 5, kind: output, shape index: {}]  }
   0x1   :  { %11 = vsyncpa [#allocation5], 0  ;;  %s27_s20 = sshll.u32 %s313_s1, 4  ;;  %s259_s21 = smov [#allocation4]   ;;  %s28_s20 = int_to_ptr.hbm [resolvable:$true] %s27_s20 }
   0x2   :  { %s29_s22 = sshll.u32 %s259_s21, 4  ;;  %s17_s25 = sshll.u32 %s312_s0, 4  ;;  %s30_s22 = int_to_ptr.vmem [resolvable:$true] %s29_s22  ;;  %s18_s25 = int_to_ptr.hbm [resolvable:$true] %s17_s25 }
   0x3   :  { %s260_s26 = smov 128   ;;  %s261_s27 = smov 8  }
   0x4   :  { %35 = dma.hbm_to_vmem [thread:$0]  %s28_s20, 512, %s30_s22, [#allocation5], %s260_s26, %s260_s26, %s261_s27  }
   0x5   :  { %s262_s28 = smov [#allocation2]   ;;  %s42_s7 = sshll.u32 %s315_s3, 4  ;;  %s43_s7 = int_to_ptr.hbm [resolvable:$true] %s42_s7 }
   0x6   :  { %s19_s29 = sshll.u32 %s262_s28, 4  ;;  %s263_s1 = smov [#allocation6]   ;;  %s20_s29 = int_to_ptr.vmem [resolvable:$true] %s19_s29 }
   0x7   :  { %22 = dma.hbm_to_vmem [thread:$0]  %s18_s25, 128, %s20_s29, [#allocation3]  }
   0x8   :  { %s44_s8 = sshll.u32 %s263_s1, 4  ;;  %s45_s8 = int_to_ptr.vmem [resolvable:$true] %s44_s8 }
   0x9   :  { %50 = dma.hbm_to_vmem [thread:$0]  %s43_s7, 2048, %s45_s8, [#allocation5], %s260_s26, %s260_s26, %s261_s27  }
   0xa   :  { %255 = dma.done.wait [#allocation3], 128  }
   0xb   :  { %256 = vsyncadd [#allocation3], 4294967168 }
   0xc   :  { %257 = dma.done.wait [#allocation5], 2560  }
   0xd   :  { %258 = vsyncadd [#allocation5], 4294964736  ;;  %v69_v0 = vld [vmem:[#allocation4 + $0x18] sm:$0xff]  ;;  %v68_v1 = vld [vmem:[#allocation4 + $0x10] sm:$0xff]  ;;  %vm74_vm0 = vcmask 261120   ;;  %vm161_vm5 = vcmask 31744  }
   0xe   :  { %90 = vmatpush.msra.mxu0 %v69_v0  ;;  %v114_v2 = vld [vmem:[#allocation6 + $0x78] sm:$0xff]  ;;  %v67_v3 = vld [vmem:[#allocation4 + $0x8] sm:$0xff]  ;;  %v113_v4 = vld [vmem:[#allocation6 + $0x70] sm:$0xff] }
   0xf   :  { %119 = vmatpush.msra.mxu1 %v114_v2  ;;  %v112_v5 = vld [vmem:[#allocation6 + $0x68] sm:$0xff]  ;;  %v66_v6 = vld [vmem:[#allocation4] sm:$0xff]  ;;  %v65_v7 = vld [vmem:[#allocation2] sm:$0xff] }
  0x10   :  { %91 = vmatpush.msra.mxu0 %v68_v1  ;;  %v111_v8 = vld [vmem:[#allocation6 + $0x60] sm:$0xff]  ;;  %v110_v9 = vld [vmem:[#allocation6 + $0x58] sm:$0xff]  ;;  %v109_v10 = vld [vmem:[#allocation6 + $0x50] sm:$0xff] }
  0x11   :  { %120 = vmatpush.msra.mxu1 %v113_v4  ;;  %v108_v11 = vld [vmem:[#allocation6 + $0x48] sm:$0xff]  ;;  %v107_v12 = vld [vmem:[#allocation6 + $0x40] sm:$0xff]  ;;  %v106_v13 = vld [vmem:[#allocation6 + $0x38] sm:$0xff] }
  0x12   :  { %92 = vmatpush.msra.mxu0 %v67_v3  ;;  %v105_v14 = vld [vmem:[#allocation6 + $0x30] sm:$0xff]  ;;  %v104_v15 = vld [vmem:[#allocation6 + $0x28] sm:$0xff]  ;;  %v103_v16 = vld [vmem:[#allocation6 + $0x20] sm:$0xff] }
  0x13   :  { %121 = vmatpush.msra.mxu1 %v112_v5  ;;  %v102_v17 = vld [vmem:[#allocation6 + $0x18] sm:$0xff]  ;;  %v101_v18 = vld [vmem:[#allocation6 + $0x10] sm:$0xff]  ;;  %v100_v19 = vld [vmem:[#allocation6 + $0x8] sm:$0xff] }
  0x14   :  { %93 = vmatpush.msra.mxu0 %v66_v6  ;;  %v99_v20 = vld [vmem:[#allocation6] sm:$0xff]  ;;  %v175_v21 = vld [vmem:[%s314_s2] ss:$0 sm:$0xff] }
  0x15   :  { %169 = vmatmul.msk.f32.vlgmr.msra.gmra.mxu0 %vm74_vm0, %v65_v7  ;;  %122 = vmatpush.msra.mxu1 %v111_v8  ;;  %v176_v25 = vld [vmem:[%s316_s4] ss:$0 sm:$0xff] }
  0x17   :  { %123 = vmatpush.msra.mxu1 %v110_v9 }
  0x19   :  { %124 = vmatpush.msra.mxu1 %v109_v10 }
  0x1b   :  { %125 = vmatpush.msra.mxu1 %v108_v11 }
  0x1d   :  { %126 = vmatpush.msra.mxu1 %v107_v12 }
  0x1f   :  { %127 = vmatpush.msra.mxu1 %v106_v13 }
  0x21   :  { %128 = vmatpush.msra.mxu1 %v105_v14 }
  0x23   :  { %129 = vmatpush.msra.mxu1 %v104_v15 }
  0x25   :  { %130 = vmatpush.msra.mxu1 %v103_v16 }
  0x27   :  { %131 = vmatpush.msra.mxu1 %v102_v17 }
  0x29   :  { %132 = vmatpush.msra.mxu1 %v101_v18 }
  0x2b   :  { %133 = vmatpush.msra.mxu1 %v100_v19 }
  0x2d   :  { %134 = vmatpush.msra.mxu1 %v99_v20 }
  0x92   :  { %v95_v22 = vpop.f32.mrf.mxu0 }
  0x93   :  { %v96_v23 = vadd.f32 %v175_v21, %v95_v22 }
  0x95   :  { %177 = vtanh.f32 %v96_v23 }
  0x9b   :  { %v178_v24 = vpop.eup %177 }
  0x9c   :  { %135 = vmatmul.f32.vlgmr.msra.gmra.mxu1 %v178_v24 }
 0x119   :  { %v136_v26 = vpop.f32.mrf.mxu1 }
 0x11a   :  { %v137_v27 = vadd.f32 %v176_v25, %v136_v26 }
 0x11c   :  { %139 = vmax.xlane.f32.xlu0 %v137_v27 }
 0x18f   :  { %v140_v28 = vpop.xlane.xlu0 %139 }
 0x190   :  { %v141_v29 = vsub.f32 %v137_v27, %v140_v28 }
 0x192   :  { %v142_v30 = vmul.f32 1.442695, %v141_v29 }
 0x194   :  { %179 = vpow2.f32 %v142_v30 }
 0x19a   :  { %v180_v31 = vpop.eup %179 }
 0x19b   :  { %144 = vadd.xlane.f32.xlu0 %v180_v31 }
 0x20e   :  { %v145_v32 = vpop.xlane.xlu0 %144 }
 0x20f   :  { %181 = vrcp.f32 %v145_v32  ;;  %v157_v36 = vand.u32 2147483648, %v145_v32  ;;  %v155_v38 = vand.u32 2147483647, %v145_v32  ;;  %vm151_vm2 = vweird.f32 %v145_v32 }
 0x211   :  { %v158_v40 = vor.u32 1.1754944e-38, %v157_v36  ;;  %vm156_vm4 = vcmp.eq.f32.partialorder %v155_v38, 8.507059e+37 }
 0x215   :  { %v182_v33 = vpop.eup %181 }
 0x216   :  { %v147_v34 = vmul.f32 %v182_v33, %v145_v32  ;;  %vm152_vm1 = vweird.f32 %v182_v33 }
 0x217   :  { %vm153_vm3 = vmor %vm151_vm2, %vm152_vm1 }
 0x218   :  { %v148_v35 = vsub.f32 1.0, %v147_v34 }
 0x21a   :  { %v149_v37 = vmul.f32 %v182_v33, %v148_v35 }
 0x21c   :  { %v150_v39 = vadd.f32 %v182_v33, %v149_v37 }
 0x21e   :  { %v154_v41 = vsel %vm153_vm3, %v182_v33, %v150_v39 }
 0x21f   :  { %v159_v42 = vsel %vm156_vm4, %v158_v40, %v154_v41 }
 0x220   :  { %v160_v43 = vmul.f32 %v180_v31, %v159_v42 }
 0x222   :  { %162 = vst.msk [vmem:[%s317_s5] sm:$0xff] %vm161_vm5, %v160_v43 }
 0x223   :  { %167 = vsyncpa [#allocation3], 1 }
 0x224   :  { %168 = vsyncpa [#allocation5], 1 }

</bundles_post_ra>
